<compile_context>
chip_gen: v6e
topology: v6e:2x2x1
jax: 0.10.0
libtpu: 0.0.40
codegen_flags: <defaults>
</compile_context>

<pallas_src>
import functools

import numpy as np
import jax
import jax.numpy as jnp
from jax import lax
from jax.experimental import pallas as pl
from jax.experimental.pallas import tpu as pltpu


def _round_up(x, m):
    return (x + m - 1) // m * m


def _mine_npairs(labels):
    """Host-side replica of lmu.convert_to_pos_pairs_with_unique_labels."""
    labels = np.asarray(labels)
    n = labels.shape[0]
    a_all, p_all = [], []
    for i in range(n):
        for j in range(n):
            if i != j and labels[i] == labels[j]:
                a_all.append(i)
                p_all.append(j)
    if not a_all:
        return np.zeros((0,), np.int32), np.zeros((0,), np.int32)
    a_all = np.asarray(a_all, np.int32)
    p_all = np.asarray(p_all, np.int32)
    _, first = np.unique(labels[a_all], return_index=True)
    return a_all[first], p_all[first]


def _npairs_kernel(a_ref, p_ref, out_ref, ce_acc, norm_acc, *,
                   num_pairs, tile_m, l2_reg):
    step = pl.program_id(0)
    nsteps = pl.num_programs(0)

    @pl.when(step == 0)
    def _init():
        ce_acc[...] = jnp.zeros_like(ce_acc)
        # Positives are resident across the whole grid -> compute their L2-norm
        # contribution exactly once (hoisted out of the per-tile body).
        p0 = p_ref[...]
        p_norm = jnp.sqrt(jnp.sum(p0 * p0, axis=1, keepdims=True))      # (Mp, 1)
        p_valid = lax.broadcasted_iota(jnp.int32, p_norm.shape, 0) < num_pairs
        norm_acc[...] = jnp.sum(jnp.where(p_valid, p_norm, 0.0), keepdims=True)

    a = a_ref[...]                                                       # (tile_m, Dp)
    p = p_ref[...]                                                       # (Mp, Dp)

    # sim[i, j] = <anchor_i, positive_j>: contract last axes directly on the MXU,
    # no explicit transpose of the positives operand.
    sim = lax.dot_general(a, p, (((1,), (1,)), ((), ())),
                          preferred_element_type=jnp.float32)            # (tile_m, Mp)

    row0 = step * tile_m
    col_ids = lax.broadcasted_iota(jnp.int32, sim.shape, 1)
    row_ids = row0 + lax.broadcasted_iota(jnp.int32, sim.shape, 0)

    # Mask padded positive columns, then stable row-wise log-sum-exp.
    sim_m = jnp.where(col_ids < num_pairs, sim, -1e30)
    m = jnp.max(sim_m, axis=1, keepdims=True)
    lse = m + jnp.log(jnp.sum(jnp.exp(sim_m - m), axis=1, keepdims=True))  # (tile_m, 1)

    # Target logit for global row g is sim[g, g]: pick the diagonal with an iota
    # compare instead of shipping a one-hot matrix through HBM.
    tgt = jnp.sum(jnp.where(col_ids == row_ids, sim, 0.0),
                  axis=1, keepdims=True)                                  # (tile_m, 1)

    per_row = lse - tgt
    row_valid = (row0 + lax.broadcasted_iota(jnp.int32, per_row.shape, 0)) < num_pairs

    ce_acc[...] += jnp.sum(jnp.where(row_valid, per_row, 0.0), keepdims=True)

    a_norm = jnp.sqrt(jnp.sum(a * a, axis=1, keepdims=True))
    norm_acc[...] += jnp.sum(jnp.where(row_valid, a_norm, 0.0), keepdims=True)

    @pl.when(step == nsteps - 1)
    def _finalize():
        ce_mean = ce_acc[...] / num_pairs
        # TODO(synk): the exact l2 regularizer differs across pytorch-metric-learning
        # versions; we use l2_reg * mean L2-norm over the 2*num_pairs selected
        # embeddings (a no-op for the module default l2_reg=0).
        l2_term = (l2_reg / (2.0 * num_pairs)) * norm_acc[...]
        out_ref[...] = ce_mean + l2_term


def npair_loss(embeddings, labels, *, l2_reg=0.0):
    # TODO(synk): the data-dependent pair mining has no clean in-kernel Pallas
    # equivalent; it runs host-side here (same result as the reference library).
    anchor_idx, positive_idx = _mine_npairs(labels)
    m = int(anchor_idx.shape[0])
    if m == 0:
        return jnp.float32(0.0)

    anchors = embeddings[jnp.asarray(anchor_idx)].astype(jnp.float32)
    positives = embeddings[jnp.asarray(positive_idx)].astype(jnp.float32)
    d = embeddings.shape[1]

    tile_m = min(128, _round_up(m, 8))       # (8,128)-legal row tile
    m_pad = _round_up(m, tile_m)
    d_pad = _round_up(d, 128)                # lane-dense MXU contraction dim

    a_p = jnp.zeros((m_pad, d_pad), jnp.float32).at[:m, :d].set(anchors)
    p_p = jnp.zeros((m_pad, d_pad), jnp.float32).at[:m, :d].set(positives)

    kernel = functools.partial(_npairs_kernel, num_pairs=m, tile_m=tile_m,
                               l2_reg=float(l2_reg))

    out = pl.pallas_call(
        kernel,
        out_shape=jax.ShapeDtypeStruct((1, 1), jnp.float32),
        grid_spec=pltpu.PrefetchScalarGridSpec(
            num_scalar_prefetch=0,
            grid=(m_pad // tile_m,),
            in_specs=[
                pl.BlockSpec((tile_m, d_pad), lambda i: (i, 0)),   # anchors: streamed
                pl.BlockSpec((m_pad, d_pad), lambda i: (0, 0)),    # positives: resident
            ],
            out_specs=pl.BlockSpec((1, 1), lambda i: (0, 0)),
            scratch_shapes=[pltpu.VMEM((1, 1), jnp.float32),       # CE sum
                            pltpu.VMEM((1, 1), jnp.float32)],      # L2-norm sum
        ),
        compiler_params=pltpu.CompilerParams(
            # the grid axis carries the loss accumulators -> must stay sequential
            dimension_semantics=("arbitrary",),
            vmem_limit_bytes=48 * 1024 * 1024,
        ),
    )(a_p, p_p)
    return out[0, 0]


def _reference(embeddings, labels, *, l2_reg=0.0):
    anchor_idx, positive_idx = _mine_npairs(labels)
    a = embeddings[jnp.asarray(anchor_idx)].astype(jnp.float32)
    p = embeddings[jnp.asarray(positive_idx)].astype(jnp.float32)
    sim = a @ p.T
    mx = jnp.max(sim, axis=1, keepdims=True)
    lse = (mx + jnp.log(jnp.sum(jnp.exp(sim - mx), axis=1, keepdims=True)))[:, 0]
    tgt = jnp.diagonal(sim)
    ce = jnp.mean(lse - tgt)
    norms = jnp.linalg.norm(jnp.concatenate([a, p], axis=0), axis=1)
    return ce + l2_reg * jnp.mean(norms)


if __name__ == "__main__":
    # NPairLoss forward takes (batch, embed_dim) embeddings + integer labels.
    N, D, C = 16, 32, 4
    key = jax.random.PRNGKey(0)
    ke, kl = jax.random.split(key)
    embeddings = jax.random.normal(ke, (N, D), dtype=jnp.float32)
    labels = jax.random.randint(kl, (N,), 0, C)

    loss = npair_loss(embeddings, labels, l2_reg=0.0)   # module default l2_reg=0
    jax.block_until_ready(loss)

    ref = _reference(embeddings, labels, l2_reg=0.0)
    assert jnp.allclose(loss, ref, rtol=1e-4, atol=1e-4), (loss, ref)
    print("KERNEL_OK")
</pallas_src>

<mosaic_0001>
module attributes {stable_mosaic.version = 11 : i64} {
  func.func @_npairs_kernel(%arg0: i32, %arg1: memref<8x128xf32, #tpu.memory_space<vmem>>, %arg2: memref<8x128xf32, #tpu.memory_space<vmem>>, %arg3: memref<1x1xf32, #tpu.memory_space<vmem>>, %arg4: memref<1x1xf32, #tpu.memory_space<vmem>>, %arg5: memref<1x1xf32, #tpu.memory_space<vmem>>) attributes {dimension_semantics = [#tpu.dimension_semantics<arbitrary>], iteration_bounds = array<i64: 1>, scalar_prefetch = 0 : i64, scratch_operands = 2 : i64, tpu.core_type = #tpu.core_type<tc>, window_params = [{transform_indices = @transform_0, window_bounds = array<i64: 8, 128>}, {pipeline_mode = #tpu.pipeline_mode<synchronous>, transform_indices = @transform_1, window_bounds = array<i64: 8, 128>}, {pipeline_mode = #tpu.pipeline_mode<synchronous>, transform_indices = @transform_2, window_bounds = array<i64: 1, 1>}]} {
    %c0_i32 = arith.constant 0 : i32
    %0 = arith.cmpi eq, %arg0, %c0_i32 : i32
    %1 = arith.extui %0 : i1 to i32
    %c0_i32_0 = arith.constant 0 : i32
    %2 = arith.cmpi ne, %1, %c0_i32_0 : i32
    scf.if %2 {
      %cst_25 = arith.constant 0.000000e+00 : f32
      %62 = vector.broadcast %cst_25 : f32 to vector<1x1xf32>
      %c0_26 = arith.constant 0 : index
      %c0_27 = arith.constant 0 : index
      %63 = vector.load %arg4[%c0_26, %c0_27] : memref<1x1xf32, #tpu.memory_space<vmem>>, vector<1x1xf32>
      tpu.vector_store %arg4[%c0_26, %c0_27], %62 {strides = array<i32>} : memref<1x1xf32, #tpu.memory_space<vmem>>, vector<1x1xf32>,
      %c0_28 = arith.constant 0 : index
      %c0_29 = arith.constant 0 : index
      %64 = vector.load %arg2[%c0_28, %c0_29] : memref<8x128xf32, #tpu.memory_space<vmem>>, vector<8x128xf32>
      %65 = arith.mulf %64, %64 : vector<8x128xf32>
      %cst_30 = arith.constant dense<0.000000e+00> : vector<8xf32>
      %66 = vector.multi_reduction <add>, %65, %cst_30 [1] : vector<8x128xf32> to vector<8xf32>
      %67 = vector.shape_cast %66 : vector<8xf32> to vector<8x1xf32>
      %68 = math.sqrt %67 : vector<8x1xf32>
      %69 = tpu.iota {dimensions = array<i32: 0>} : vector<8x1xi32>
      %c4_i32_31 = arith.constant 4 : i32
      %70 = vector.broadcast %c4_i32_31 : i32 to vector<8x1xi32>
      %71 = arith.cmpi slt, %69, %70 : vector<8x1xi32>
      %cst_32 = arith.constant 0.000000e+00 : f32
      %72 = vector.broadcast %cst_32 : f32 to vector<8x1xf32>
      %73 = arith.select %71, %68, %72 : vector<8x1xi1>, vector<8x1xf32>
      %74 = vector.shape_cast %73 : vector<8x1xf32> to vector<1x8x1xf32>
      %cst_33 = arith.constant dense<0.000000e+00> : vector<1xf32>
      %75 = vector.multi_reduction <add>, %74, %cst_33 [1, 2] : vector<1x8x1xf32> to vector<1xf32>
      %76 = vector.shape_cast %75 : vector<1xf32> to vector<1x1x1xf32>
      %77 = vector.extract %76[0, 0, 0] : f32 from vector<1x1x1xf32>
      %78 = vector.broadcast %77 : f32 to vector<1x1xf32>
      %c0_34 = arith.constant 0 : index
      %c0_35 = arith.constant 0 : index
      %79 = vector.load %arg5[%c0_34, %c0_35] : memref<1x1xf32, #tpu.memory_space<vmem>>, vector<1x1xf32>
      tpu.vector_store %arg5[%c0_34, %c0_35], %78 {strides = array<i32>} : memref<1x1xf32, #tpu.memory_space<vmem>>, vector<1x1xf32>,
    } else {
    }
    %c0 = arith.constant 0 : index
    %c0_1 = arith.constant 0 : index
    %3 = vector.load %arg1[%c0, %c0_1] : memref<8x128xf32, #tpu.memory_space<vmem>>, vector<8x128xf32>
    %c0_2 = arith.constant 0 : index
    %c0_3 = arith.constant 0 : index
    %4 = vector.load %arg2[%c0_2, %c0_3] : memref<8x128xf32, #tpu.memory_space<vmem>>, vector<8x128xf32>
    %cst = arith.constant dense<0.000000e+00> : vector<8x8xf32>
    %5 = tpu.matmul %3, %4, %cst {dimension_numbers = #tpu.dot_dimension_numbers<[1], [1], [0], [0], [0, 0, 1, 0], [], []>} : vector<8x128xf32>, vector<8x128xf32>, vector<8x8xf32> -> vector<8x8xf32>
    %c8_i32 = arith.constant 8 : i32
    %6 = arith.muli %arg0, %c8_i32 : i32
    %7 = tpu.iota {dimensions = array<i32: 1>} : vector<8x8xi32>
    %8 = tpu.iota {dimensions = array<i32: 0>} : vector<8x8xi32>
    %9 = vector.broadcast %6 : i32 to vector<8x8xi32>
    %10 = arith.addi %9, %8 : vector<8x8xi32>
    %c4_i32 = arith.constant 4 : i32
    %11 = vector.broadcast %c4_i32 : i32 to vector<8x8xi32>
    %12 = arith.cmpi slt, %7, %11 : vector<8x8xi32>
    %cst_4 = arith.constant -1.000000e+30 : f32
    %13 = vector.broadcast %cst_4 : f32 to vector<8x8xf32>
    %14 = arith.select %12, %5, %13 : vector<8x8xi1>, vector<8x8xf32>
    %cst_5 = arith.constant dense<0xFF800000> : vector<8xf32>
    %15 = vector.multi_reduction <maximumf>, %14, %cst_5 [1] : vector<8x8xf32> to vector<8xf32>
    %16 = vector.shape_cast %15 : vector<8xf32> to vector<8x1xf32>
    %17 = vector.broadcast %16 : vector<8x1xf32> to vector<8x8xf32>
    %18 = arith.subf %14, %17 : vector<8x8xf32>
    %19 = math.exp %18 : vector<8x8xf32>
    %cst_6 = arith.constant dense<0.000000e+00> : vector<8xf32>
    %20 = vector.multi_reduction <add>, %19, %cst_6 [1] : vector<8x8xf32> to vector<8xf32>
    %21 = vector.shape_cast %20 : vector<8xf32> to vector<8x1xf32>
    %22 = math.log %21 : vector<8x1xf32>
    %23 = arith.addf %16, %22 : vector<8x1xf32>
    %24 = arith.cmpi eq, %7, %10 : vector<8x8xi32>
    %cst_7 = arith.constant 0.000000e+00 : f32
    %25 = vector.broadcast %cst_7 : f32 to vector<8x8xf32>
    %26 = arith.select %24, %5, %25 : vector<8x8xi1>, vector<8x8xf32>
    %cst_8 = arith.constant dense<0.000000e+00> : vector<8xf32>
    %27 = vector.multi_reduction <add>, %26, %cst_8 [1] : vector<8x8xf32> to vector<8xf32>
    %28 = vector.shape_cast %27 : vector<8xf32> to vector<8x1xf32>
    %29 = arith.subf %23, %28 : vector<8x1xf32>
    %30 = tpu.iota {dimensions = array<i32: 0>} : vector<8x1xi32>
    %31 = vector.broadcast %6 : i32 to vector<8x1xi32>
    %32 = arith.addi %31, %30 : vector<8x1xi32>
    %c4_i32_9 = arith.constant 4 : i32
    %33 = vector.broadcast %c4_i32_9 : i32 to vector<8x1xi32>
    %34 = arith.cmpi slt, %32, %33 : vector<8x1xi32>
    %c0_10 = arith.constant 0 : index
    %c0_11 = arith.constant 0 : index
    %35 = vector.load %arg4[%c0_10, %c0_11] : memref<1x1xf32, #tpu.memory_space<vmem>>, vector<1x1xf32>
    %cst_12 = arith.constant 0.000000e+00 : f32
    %36 = vector.broadcast %cst_12 : f32 to vector<8x1xf32>
    %37 = arith.select %34, %29, %36 : vector<8x1xi1>, vector<8x1xf32>
    %38 = vector.shape_cast %37 : vector<8x1xf32> to vector<1x8x1xf32>
    %cst_13 = arith.constant dense<0.000000e+00> : vector<1xf32>
    %39 = vector.multi_reduction <add>, %38, %cst_13 [1, 2] : vector<1x8x1xf32> to vector<1xf32>
    %40 = vector.shape_cast %39 : vector<1xf32> to vector<1x1x1xf32>
    %41 = vector.extract %40[0, 0, 0] : f32 from vector<1x1x1xf32>
    %42 = vector.broadcast %41 : f32 to vector<1x1xf32>
    %43 = arith.addf %35, %42 : vector<1x1xf32>
    %c0_14 = arith.constant 0 : index
    %c0_15 = arith.constant 0 : index
    %44 = vector.load %arg4[%c0_14, %c0_15] : memref<1x1xf32, #tpu.memory_space<vmem>>, vector<1x1xf32>
    tpu.vector_store %arg4[%c0_14, %c0_15], %43 {strides = array<i32>} : memref<1x1xf32, #tpu.memory_space<vmem>>, vector<1x1xf32>,
    %45 = arith.mulf %3, %3 : vector<8x128xf32>
    %cst_16 = arith.constant dense<0.000000e+00> : vector<8xf32>
    %46 = vector.multi_reduction <add>, %45, %cst_16 [1] : vector<8x128xf32> to vector<8xf32>
    %47 = vector.shape_cast %46 : vector<8xf32> to vector<8x1xf32>
    %48 = math.sqrt %47 : vector<8x1xf32>
    %c0_17 = arith.constant 0 : index
    %c0_18 = arith.constant 0 : index
    %49 = vector.load %arg5[%c0_17, %c0_18] : memref<1x1xf32, #tpu.memory_space<vmem>>, vector<1x1xf32>
    %cst_19 = arith.constant 0.000000e+00 : f32
    %50 = vector.broadcast %cst_19 : f32 to vector<8x1xf32>
    %51 = arith.select %34, %48, %50 : vector<8x1xi1>, vector<8x1xf32>
    %52 = vector.shape_cast %51 : vector<8x1xf32> to vector<1x8x1xf32>
    %cst_20 = arith.constant dense<0.000000e+00> : vector<1xf32>
    %53 = vector.multi_reduction <add>, %52, %cst_20 [1, 2] : vector<1x8x1xf32> to vector<1xf32>
    %54 = vector.shape_cast %53 : vector<1xf32> to vector<1x1x1xf32>
    %55 = vector.extract %54[0, 0, 0] : f32 from vector<1x1x1xf32>
    %56 = vector.broadcast %55 : f32 to vector<1x1xf32>
    %57 = arith.addf %49, %56 : vector<1x1xf32>
    %c0_21 = arith.constant 0 : index
    %c0_22 = arith.constant 0 : index
    %58 = vector.load %arg5[%c0_21, %c0_22] : memref<1x1xf32, #tpu.memory_space<vmem>>, vector<1x1xf32>
    tpu.vector_store %arg5[%c0_21, %c0_22], %57 {strides = array<i32>} : memref<1x1xf32, #tpu.memory_space<vmem>>, vector<1x1xf32>,
    %c0_i32_23 = arith.constant 0 : i32
    %59 = arith.cmpi eq, %arg0, %c0_i32_23 : i32
    %60 = arith.extui %59 : i1 to i32
    %c0_i32_24 = arith.constant 0 : i32
    %61 = arith.cmpi ne, %60, %c0_i32_24 : i32
    scf.if %61 {
      %c0_25 = arith.constant 0 : index
      %c0_26 = arith.constant 0 : index
      %62 = vector.load %arg4[%c0_25, %c0_26] : memref<1x1xf32, #tpu.memory_space<vmem>>, vector<1x1xf32>
      %cst_27 = arith.constant 4.000000e+00 : f32
      %63 = vector.broadcast %cst_27 : f32 to vector<1x1xf32>
      %64 = arith.divf %62, %63 : vector<1x1xf32>
      %c0_28 = arith.constant 0 : index
      %c0_29 = arith.constant 0 : index
      %65 = vector.load %arg5[%c0_28, %c0_29] : memref<1x1xf32, #tpu.memory_space<vmem>>, vector<1x1xf32>
      %cst_30 = arith.constant 0.000000e+00 : f32
      %66 = vector.broadcast %cst_30 : f32 to vector<1x1xf32>
      %67 = arith.mulf %66, %65 : vector<1x1xf32>
      %68 = arith.addf %64, %67 : vector<1x1xf32>
      %c0_31 = arith.constant 0 : index
      %c0_32 = arith.constant 0 : index
      %69 = vector.load %arg3[%c0_31, %c0_32] : memref<1x1xf32, #tpu.memory_space<vmem>>, vector<1x1xf32>
      tpu.vector_store %arg3[%c0_31, %c0_32], %68 {strides = array<i32>} : memref<1x1xf32, #tpu.memory_space<vmem>>, vector<1x1xf32>,
    } else {
    }
    return
  }
  func.func @transform_0(%arg0: i32) -> (i32, i32) {
    %c0_i32 = arith.constant 0 : i32
    %c0_i32_0 = arith.constant 0 : i32
    return %arg0, %c0_i32 : i32, i32
  }
  func.func @transform_1(%arg0: i32) -> (i32, i32) {
    %c0_i32 = arith.constant 0 : i32
    %c0_i32_0 = arith.constant 0 : i32
    %c0_i32_1 = arith.constant 0 : i32
    return %c0_i32, %c0_i32_0 : i32, i32
  }
  func.func @transform_2(%arg0: i32) -> (i32, i32) {
    %c0_i32 = arith.constant 0 : i32
    %c0_i32_0 = arith.constant 0 : i32
    %c0_i32_1 = arith.constant 0 : i32
    return %c0_i32, %c0_i32_0 : i32, i32
  }
}

</mosaic_0001>

<bundles_post_ra>
// kernel: tpu_custom_call.1
= control target key start
LH: loop header
LB: loop body
LE: loop exit
PB: predicated region body
PF: predicated region fallthrough
CT: control target
= control target key end

     0   :  { %7 = vsyncpa [#allocation5], 0  ;;  %s374_s0 = inlined_call_operand.hbm [shape: f32[8,128], index: 0, kind: input, shape index: {}]   ;;  %s375_s1 = inlined_call_operand.hbm [shape: f32[8,128], index: 1, kind: input, shape index: {}]   ;;  %s376_s2 = inlined_call_operand.hbm [shape: f32[1,1], index: 2, kind: output, shape index: {}]  }
   0x1   :  { %8 = vsyncpa [#allocation8], 0 }
   0x2   :  { %9 = vsyncpa [#allocation6], 0  ;;  %s331_s9 = smov [#allocation4]   ;;  %s332_s11 = smov [#allocation7]  }
   0x3   :  { %s16_s10 = sshll.u32 %s331_s9, 4  ;;  %s26_s12 = sshll.u32 %s332_s11, 4  ;;  %s17_s10 = int_to_ptr.vmem [resolvable:$true] %s16_s10  ;;  %s27_s12 = int_to_ptr.vmem [resolvable:$true] %s26_s12 }
   0x4   :  { %s273_s13 = scalar_lea.vmem %s17_s10, 128  ;;  %p278_p1 = scmp.lt.s32.totalorder %s17_s10, %s17_s10 }
   0x5   :  { %p274_p0 = scmp.ne.s32.totalorder %s17_s10, %s273_s13  ;;  %p279_p2 = scmp.lt.s32.totalorder %s273_s13, %s273_s13 }
   0x7   :  { %p280_p3 = por %p279_p2, %p278_p1 }
   0x9   :  { %p281_p4 = pnand %p280_p3, %p274_p0 }
   0xb   :  { %284 = shalt.err (!%p281_p4)
}
   0xc   :  { %19 = dma.hbm_to_vmem [thread:$0]  %s374_s0, 128, %s17_s10, [#allocation5]  }
   0xd   :  { %s293_s16 = scalar_lea.vmem %s27_s12, 128  ;;  %p298_p6 = scmp.lt.s32.totalorder %s27_s12, %s27_s12 }
   0xe   :  { %p294_p5 = scmp.ne.s32.totalorder %s27_s12, %s293_s16  ;;  %p299_p7 = scmp.lt.s32.totalorder %s293_s16, %s293_s16 }
  0x10   :  { %p300_p8 = por %p299_p7, %p298_p6 }
  0x12   :  { %p301_p9 = pnand %p300_p8, %p294_p5 }
  0x14   :  { %304 = shalt.err (!%p301_p9)
}
  0x15   :  { %29 = dma.hbm_to_vmem [thread:$0]  %s375_s1, 128, %s27_s12, [#allocation8]  }
  0x16   :  { %325 = dma.done.wait [#allocation5], 128  }
  0x17   :  { %326 = vsyncadd [#allocation5], 4294967168 }
  0x18   :  { %327 = dma.done.wait [#allocation8], 128  }
  0x19   :  { %328 = vsyncadd [#allocation8], 4294967168  ;;  %vm40_vm0 = vcmask 0   ;;  %v333_v0 = vmov 0.0   ;;  %vm334_vm1 = vmmov 0   ;;  %v71_v1 = vld [vmem:[#allocation7] sm:$0xff]  ;;  %v53_v3 = vlaneseq }
  0x1a   :  { %41 = vst.msk [vmem:[#allocation2] sm:$0x1] %vm40_vm0, %v333_v0  ;;  %241 = vmatprep.subr.mxu0 %v333_v0  ;;  %243 = vmatprep.mubr.msk.f32.mxu0 %vm334_vm1, %v333_v0  ;;  %v70_v2 = vld [vmem:[#allocation4] sm:$0xff]  ;;  %vm151_vm3 = vcmask 64512   ;;  %v43_v10 = vmul.f32 %v71_v1, %v71_v1  ;;  %vm57_vm8 = vcmask 7168   ;;  %s335_s20 = smov [#allocation9]  }
  0x1b   :  { %242 = vmatpush3.xpose.msra.mxu0 %v71_v1  ;;  %v144_v4 = vand.u32 127, %v53_v3  ;;  %v54_v6 = vshrl.u32 %v53_v3, 7  ;;  %v188_v21 = vmul.f32 %v70_v2, %v70_v2  ;;  %s229_s21 = sshll.u32 %s335_s20, 4  ;;  %s230_s21 = int_to_ptr.vmem [resolvable:$true] %s229_s21 }
  0x1c   :  { %s305_s22 = scalar_lea.vmem %s230_s21, 16  ;;  %s309_s23 = scalar_lea.vmem %s230_s21, 32 }
  0x1d   :  { %vm149_vm2 = vcmp.lt.s32.totalorder %v144_v4, 4  ;;  %vm164_vm4 = vcmp.eq.s32.totalorder %v144_v4, %v54_v6  ;;  %vm55_vm7 = vcmp.lt.s32.totalorder %v54_v6, 4  ;;  %p306_p10 = scmp.ne.s32.totalorder %s230_s21, %s305_s22  ;;  %p310_p11 = scmp.lt.s32.totalorder %s230_s21, %s230_s21 }
  0x1e   :  { %244 = vmatmul.mubr.f32.vlgmr.msra.gmra.mxu0 %v70_v2  ;;  %p311_p12 = scmp.lt.s32.totalorder %s309_s23, %s305_s22 }
  0x20   :  { %p312_p13 = por %p311_p12, %p310_p11 }
  0x21   :  { %v171_v1 = vld [vmem:[#allocation2] sm:$0x1] }
  0x22   :  { %p313_p0 = pnand %p312_p13, %p306_p10 }
  0xde   :  { %v138_v5 = vpop.f32.mrf.mxu0 }
  0xdf   :  { %v150_v7 = vsel %vm149_vm2, %v138_v5, -1e+30  ;;  %v165_v11 = vsel %vm164_vm4, %v138_v5, 0.0 }
  0xe0   :  { %v245_v8 = vpop.f32.mrf.mxu0  ;;  %v152_v9 = vsel %vm151_vm3, %v150_v7, -inf  ;;  %v166_v12 = vsel %vm151_vm3, %v165_v11, 0.0 }
  0xe1   :  { %153 = vmax.xlane.f32.xlu0 %v152_v9 }
  0xe5   :  { %44 = vadd.xlane.f32.xlu0 %v43_v10 }
  0xe9   :  { %167 = vadd.xlane.f32.xlu0 %v166_v12 }
 0x16a   :  { %v154_v13 = vpop.xlane.xlu0 %153 }
 0x16b   :  { %v155_v14 = vsub.f32 %v150_v7, %v154_v13 }
 0x16d   :  { %v156_v15 = vmul.f32 1.442695, %v155_v14 }
 0x16e   :  { %v45_v16 = vpop.xlane.xlu0 %44 }
 0x16f   :  { %257 = vpow2.f32 %v156_v15  ;;  %vm48_vm5 = vcmp.eq.f32.partialorder %v45_v16, inf  ;;  %v51_v20 = vand.u32 2147483648, %v45_v16  ;;  %vm50_vm6 = vcmp.eq.f32.partialorder %v45_v16, 0.0 }
 0x170   :  { %259 = vrsqrt.f32 %v45_v16 }
 0x172   :  { %v168_v39 = vpop.xlane.xlu0 %167 }
 0x17c   :  { %v258_v17 = vpop.eup %257 }
 0x17d   :  { %v260_v18 = vpop.eup %259  ;;  %v158_v19 = vsel %vm151_vm3, %v258_v17, 0.0 }
 0x17e   :  { %159 = vadd.xlane.f32.xlu1 %v158_v19  ;;  %v47_v22 = vmul.f32 %v260_v18, %v45_v16 }
 0x180   :  { %v49_v23 = vsel %vm48_vm5, %v45_v16, %v47_v22 }
 0x181   :  { %v52_v24 = vsel %vm50_vm6, %v51_v20, %v49_v23 }
 0x182   :  { %189 = vadd.xlane.f32.xlu1 %v188_v21  ;;  %v56_v25 = vsel %vm55_vm7, %v52_v24, 0.0 }
 0x183   :  { %v58_v26 = vsel %vm57_vm8, %v56_v25, 0.0 }
 0x186   :  { %59 = vadd.xlane.f32.xlu1 %v58_v26 }
 0x207   :  { %v160_v27 = vpop.xlane.xlu1 %159 }
 0x208   :  { %261 = vlog2.f32 %v160_v27 }
 0x20b   :  { %v190_v28 = vpop.xlane.xlu1 %189 }
 0x20c   :  { %263 = vrsqrt.f32 %v190_v28  ;;  %vm193_vm9 = vcmp.eq.f32.partialorder %v190_v28, inf  ;;  %v196_v43 = vand.u32 2147483648, %v190_v28  ;;  %vm195_vm10 = vcmp.eq.f32.partialorder %v190_v28, 0.0 }
 0x20f   :  { %v60_v29 = vpop.xlane.xlu1 %59 }
 0x210   :  { %v61_v30 = vrot.slane %v60_v29, 4 }
 0x212   :  { %v62_v31 = vadd.f32 %v61_v30, %v60_v29 }
 0x214   :  { %v63_v32 = vrot.slane %v62_v31, 2 }
 0x215   :  { %v262_v33 = vpop.eup %261 }
 0x216   :  { %v162_v34 = vmul.f32 0.6931472, %v262_v33  ;;  %v64_v35 = vadd.f32 %v63_v32, %v62_v31 }
 0x218   :  { %v163_v36 = vadd.f32 %v162_v34, %v154_v13  ;;  %v65_v37 = vrot.slane %v64_v35, 1 }
 0x219   :  { %v264_v38 = vpop.eup %263 }
 0x21a   :  { %v169_v40 = vsub.f32 %v163_v36, %v168_v39  ;;  %v192_v41 = vmul.f32 %v264_v38, %v190_v28  ;;  %v66_v42 = vadd.f32 %v65_v37, %v64_v35 }
 0x21c   :  { %v172_v44 = vsel %vm55_vm7, %v169_v40, 0.0  ;;  %v194_v45 = vsel %vm193_vm9, %v190_v28, %v192_v41  ;;  %246 = vpush %v66_v42 }
 0x21d   :  { %v174_v46 = vsel %vm57_vm8, %v172_v44, 0.0  ;;  %v197_v47 = vsel %vm195_vm10, %v196_v43, %v194_v45 }
 0x21e   :  { %175 = vadd.xlane.f32.xlu0 %v174_v46  ;;  %v199_v48 = vsel %vm55_vm7, %v197_v47, 0.0 }
 0x21f   :  { %v200_v49 = vsel %vm57_vm8, %v199_v48, 0.0 }
 0x220   :  { %201 = vadd.xlane.f32.xlu1 %v200_v49 }
 0x24d   :  { %s247_s0 = spop %246 }
 0x24e   :  { %v68_v50 = vstv %s247_s0 }
 0x24f   :  { %69 = vst.msk [vmem:[#allocation3] sm:$0x1] %vm40_vm0, %v68_v50 }
 0x256   :  { %v198_v4 = vld [vmem:[#allocation3] sm:$0x1] }
 0x2a7   :  { %v176_v51 = vpop.xlane.xlu0 %175 }
 0x2a8   :  { %v177_v52 = vrot.slane %v176_v51, 4 }
 0x2a9   :  { %v202_v53 = vpop.xlane.xlu1 %201 }
 0x2aa   :  { %v178_v54 = vadd.f32 %v177_v52, %v176_v51  ;;  %v203_v55 = vrot.slane %v202_v53, 4 }
 0x2ac   :  { %v179_v56 = vrot.slane %v178_v54, 2  ;;  %v204_v57 = vadd.f32 %v203_v55, %v202_v53 }
 0x2ae   :  { %v180_v58 = vadd.f32 %v179_v56, %v178_v54  ;;  %v205_v59 = vrot.slane %v204_v57, 2 }
 0x2b0   :  { %v206_v60 = vadd.f32 %v205_v59, %v204_v57  ;;  %v181_v61 = vrot.slane %v180_v58, 1 }
 0x2b2   :  { %v182_v62 = vadd.f32 %v181_v61, %v180_v58  ;;  %v207_v63 = vrot.slane %v206_v60, 1 }
 0x2b4   :  { %248 = vpush %v182_v62  ;;  %v208_v0 = vadd.f32 %v207_v63, %v206_v60 }
 0x2b6   :  { %250 = vpush %v208_v0 }
 0x2e5   :  { %s249_s1 = spop %248 }
 0x2e6   :  { %v184_v2 = vstv %s249_s1 }
 0x2e7   :  { %v185_v3 = vadd.f32 %v184_v2, %v171_v1  ;;  %s251_s19 = spop %250 }
 0x2e8   :  { %v210_v5 = vstv %s251_s19 }
 0x2e9   :  { %187 = vst.msk [vmem:[#allocation2] sm:$0x1] %vm40_vm0, %v185_v3  ;;  %v211_v6 = vadd.f32 %v210_v5, %v198_v4 }
 0x2eb   :  { %212 = vst.msk [vmem:[#allocation3] sm:$0x1] %vm40_vm0, %v211_v6 }
 0x2f0   :  { %v216_v7 = vld [vmem:[#allocation2] sm:$0x1] }
 0x2f1   :  { %v218_v9 = vmul.f32 0.25, %v216_v7 }
 0x2f2   :  { %v219_v8 = vld [vmem:[#allocation3] sm:$0x1] }
 0x2f3   :  { %v220_v10 = vmul.f32 0.0, %v219_v8 }
 0x2f5   :  { %v221_v11 = vadd.f32 %v220_v10, %v218_v9 }
 0x2f7   :  { %222 = vst.msk [vmem:[#allocation9] sm:$0x1] %vm40_vm0, %v221_v11 }
 0x2f8   :  { %316 = shalt.err (!%p313_p0)
}
 0x2f9   :  { %232 = dma.vmem_to_hbm [thread:$0]  %s230_s21, 16, %s376_s2, [#allocation6]  }
 0x2fa   :  { %329 = dma.done.wait [#allocation6], 16  }
 0x2fb   :  { %330 = vsyncadd [#allocation6], 4294967280 }
 0x2fc   :  { %236 = vsyncpa [#allocation5], 1 }
 0x2fd   :  { %237 = vsyncpa [#allocation8], 1 }
 0x2fe   :  { %238 = vsyncpa [#allocation6], 1 }

</bundles_post_ra>
